<compile_context>
chip_gen: v7x
topology: tpu7x:2x2x1
jax: 0.10.0
libtpu: 0.0.40
codegen_flags: <defaults>
</compile_context>

<pallas_src>
import jax
import jax.numpy as jnp
from jax.experimental import pallas as pl
from jax.experimental.pallas import tpu as pltpu


_EPS = 1e-12  # matches F.normalize default eps


# ---------------------------------------------------------------------------
# Shared in-kernel math.  All operands are (D, TB): latent dim on sublanes,
# batch on the 128-wide lane axis.  Everything f32.
# ---------------------------------------------------------------------------
def _l2norm(x):
    ss = jnp.sum(x * x, axis=0, keepdims=True)                 # (1, TB)
    return x * jax.lax.rsqrt(jnp.maximum(ss, _EPS * _EPS))     # == x / max(||x||, eps)


def _transfer(e, nv):
    # TransH hyperplane projection: e - <e, nv> nv
    return e - jnp.sum(e * nv, axis=0, keepdims=True) * nv


def _triple_score(h, t, r, nv):
    """normalize -> hyperplane transfer -> L1(h + r - t); returns (1, TB)."""
    nvn = _l2norm(nv)
    h = _transfer(_l2norm(h), nvn)
    t = _transfer(_l2norm(t), nvn)
    r = _l2norm(r)
    return jnp.sum(jnp.abs(h + r - t), axis=0, keepdims=True)


# ---------------------------------------------------------------------------
# Main kernel: in-kernel gather via one-hot matmul on the MXU.
# ---------------------------------------------------------------------------
def _transh_gather_kernel(margin_ref, idx_ref, take_ref,
                          ent_t_ref, rel_t_ref, nrm_t_ref, out_ref):
    """idx_ref  : (8, TB) int32, rows (pos_h, pos_t, pos_r, neg_h, neg_t, neg_r, 0, 0)
       take_ref : (1, TB) f32 mask
       *_t_ref  : (D, N)  f32 whole transposed embedding tables (VMEM resident)
       out_ref  : (2, TB) f32 — row 0: masked hinge, row 1: -n_score
    """
    margin = margin_ref[0]

    def one_hot(row, n):
        idx = idx_ref[row:row + 1, :]                                    # (1, TB)
        row_ids = jax.lax.broadcasted_iota(jnp.int32, (n, idx.shape[1]), 0)
        return (row_ids == idx).astype(jnp.float32)                      # (N, TB)

    def gather(tbl_ref, oh):
        # (D, N) @ (N, TB) -> (D, TB); one-hot columns select exact table rows.
        return jnp.dot(tbl_ref[...], oh, preferred_element_type=jnp.float32)

    n_ent = ent_t_ref.shape[1]
    n_rel = rel_t_ref.shape[1]

    # Negative triple first, to completion (halves the peak live operand set).
    oh_nr = one_hot(5, n_rel)
    n_score = _triple_score(gather(ent_t_ref, one_hot(3, n_ent)),
                            gather(ent_t_ref, one_hot(4, n_ent)),
                            gather(rel_t_ref, oh_nr),
                            gather(nrm_t_ref, oh_nr))

    oh_pr = one_hot(2, n_rel)
    p_score = _triple_score(gather(ent_t_ref, one_hot(0, n_ent)),
                            gather(ent_t_ref, one_hot(1, n_ent)),
                            gather(rel_t_ref, oh_pr),
                            gather(nrm_t_ref, oh_pr))

    # MarginRankingLoss(y=-1, reduction='sum') restricted to `take`:
    # per-triple masked hinge; the scalar sum happens in the wrapper.
    out_ref[0:1, :] = jnp.maximum(p_score - n_score + margin, 0.0) * take_ref[...]
    out_ref[1:2, :] = -n_score


# ---------------------------------------------------------------------------
# Fallback kernel for tables too large for VMEM: pre-gathered bf16 slab.
# ---------------------------------------------------------------------------
def _transh_slab_kernel(margin_ref, take_ref, emb_ref, out_ref):
    """emb_ref: (8*D, TB) bf16, row blocks (p_h, p_t, p_r, p_norm, n_h, n_t, n_r, n_norm)."""
    margin = margin_ref[0]
    d = emb_ref.shape[0] // 8

    def op(k):  # upcast right after load; arithmetic stays f32
        return emb_ref[k * d:(k + 1) * d, :].astype(jnp.float32)

    n_score = _triple_score(op(4), op(5), op(6), op(7))
    p_score = _triple_score(op(0), op(1), op(2), op(3))

    out_ref[0:1, :] = jnp.maximum(p_score - n_score + margin, 0.0) * take_ref[...]
    out_ref[1:2, :] = -n_score


def _round_up(x, m):
    return ((x + m - 1) // m) * m


def transh_discriminator_forward(ent_emb, rel_emb, norm_vector, pos, neg, take,
                                 margin=1.0, tile_b=1024, max_gather_rows=1024):
    """Returns (loss_scalar, minus_neg_score[B]) exactly like Discriminator.forward."""
    assert tile_b % 128 == 0, "tile_b must be a multiple of 128 (lane width)"
    pos_h, pos_r, pos_t = pos
    neg_h, neg_r, neg_t = neg
    B = int(pos_h.shape[0])
    D = int(ent_emb.shape[1])

    # ---- batch tiling: always lane-dense (multiple of 128), aim for >=4 grid
    # steps when B allows so "parallel" shards across both v7x TensorCores. ----
    b128 = _round_up(B, 128)
    TB = min(tile_b, max(128, _round_up(pl.cdiv(b128, 4), 128)))
    B_pad = _round_up(b128, TB)
    n_tiles = B_pad // TB

    take_f = jnp.pad(take.astype(jnp.float32).reshape(1, B),
                     ((0, 0), (0, B_pad - B)))            # padded triples masked out
    margin_arr = jnp.full((1,), margin, dtype=jnp.float32)

    smem_spec = pl.BlockSpec(memory_space=pltpu.MemorySpace.SMEM)
    take_spec = pl.BlockSpec((1, TB), lambda i: (0, i))
    out_spec = pl.BlockSpec((2, TB), lambda i: (0, i))
    out_shape = jax.ShapeDtypeStruct((2, B_pad), jnp.float32)
    cparams = pltpu.CompilerParams(dimension_semantics=("parallel",))

    if max(ent_emb.shape[0], rel_emb.shape[0]) <= max_gather_rows:
        # ---- main path: in-kernel gather (tables whole in VMEM) -------------
        e_pad = _round_up(ent_emb.shape[0], 8)
        r_pad = _round_up(rel_emb.shape[0], 8)
        ent_t = jnp.pad(ent_emb.astype(jnp.float32),
                        ((0, e_pad - ent_emb.shape[0]), (0, 0))).T        # (D, E)
        rel_t = jnp.pad(rel_emb.astype(jnp.float32),
                        ((0, r_pad - rel_emb.shape[0]), (0, 0))).T        # (D, R)
        nrm_t = jnp.pad(norm_vector.astype(jnp.float32),
                        ((0, r_pad - norm_vector.shape[0]), (0, 0))).T    # (D, R)

        idx = jnp.stack([pos_h, pos_t, pos_r, neg_h, neg_t, neg_r], axis=0)
        idx = jnp.pad(idx.astype(jnp.int32), ((0, 2), (0, B_pad - B)))    # (8, B_pad)

        out = pl.pallas_call(
            _transh_gather_kernel,
            grid=(n_tiles,),
            in_specs=[
                smem_spec,                                    # margin (scalar, SMEM)
                pl.BlockSpec((8, TB), lambda i: (0, i)),      # indices (lane-dense)
                take_spec,                                    # take mask
                pl.BlockSpec((D, e_pad), lambda i: (0, 0)),   # ent_emb^T  (whole table)
                pl.BlockSpec((D, r_pad), lambda i: (0, 0)),   # rel_emb^T  (whole table)
                pl.BlockSpec((D, r_pad), lambda i: (0, 0)),   # norm_vec^T (whole table)
            ],
            out_specs=out_spec,
            out_shape=out_shape,
            compiler_params=cparams,
        )(margin_arr, idx, take_f, ent_t, rel_t, nrm_t)
    else:
        # ---- fallback: XLA-side gather, bf16-streamed slab -------------------
        # TODO(synk): for huge entity tables a scalar-prefetch + manual-DMA row
        #             gather would avoid this HBM slab round trip entirely.
        gathered = jnp.concatenate(
            [ent_emb[pos_h], ent_emb[pos_t], rel_emb[pos_r], norm_vector[pos_r],
             ent_emb[neg_h], ent_emb[neg_t], rel_emb[neg_r], norm_vector[neg_r]],
            axis=1)                                                       # (B, 8D)
        slab = jnp.pad(gathered.astype(jnp.bfloat16).T,
                       ((0, 0), (0, B_pad - B)))                          # (8D, B_pad)

        out = pl.pallas_call(
            _transh_slab_kernel,
            grid=(n_tiles,),
            in_specs=[smem_spec, take_spec,
                      pl.BlockSpec((8 * D, TB), lambda i: (0, i))],
            out_specs=out_spec,
            out_shape=out_shape,
            compiler_params=cparams,
        )(margin_arr, take_f, slab)

    loss = jnp.sum(out[0])               # padded / un-taken lanes contribute 0
    return loss, out[1, :B]


# ---------------------------------------------------------------------------
# Pure-JAX reference mirroring the PyTorch module, for correctness checks.
# ---------------------------------------------------------------------------
def _reference_forward(ent_emb, rel_emb, norm_vector, pos, neg, take, margin=1.0):
    def l2norm(x):
        n = jnp.sqrt(jnp.sum(x * x, axis=-1, keepdims=True))
        return x / jnp.maximum(n, _EPS)

    def transfer(e, nv):
        return e - jnp.sum(e * nv, axis=-1, keepdims=True) * nv

    pos_h, pos_r, pos_t = pos
    neg_h, neg_r, neg_t = neg
    p_nv = l2norm(norm_vector[pos_r])
    n_nv = l2norm(norm_vector[neg_r])
    p_h = transfer(l2norm(ent_emb[pos_h]), p_nv)
    p_t = transfer(l2norm(ent_emb[pos_t]), p_nv)
    p_r = l2norm(rel_emb[pos_r])
    n_h = transfer(l2norm(ent_emb[neg_h]), n_nv)
    n_t = transfer(l2norm(ent_emb[neg_t]), n_nv)
    n_r = l2norm(rel_emb[neg_r])
    p_score = jnp.sum(jnp.abs(p_h + p_r - p_t), axis=-1)
    n_score = jnp.sum(jnp.abs(n_h + n_r - n_t), axis=-1)
    m = take.astype(jnp.float32)
    loss = jnp.sum(m * jnp.maximum(p_score - n_score + margin, 0.0))
    return loss, -n_score


def _xavier_uniform(key, shape):
    bound = (6.0 / (shape[0] + shape[1])) ** 0.5
    return jax.random.uniform(key, shape, jnp.float32, -bound, bound)


def _make_batch(key, batch, ent_size, rel_size):
    k_ph, k_pr, k_pt, k_nh, k_nt, k_take = jax.random.split(key, 6)
    pos_h = jax.random.randint(k_ph, (batch,), 0, ent_size)
    pos_r = jax.random.randint(k_pr, (batch,), 0, rel_size)
    pos_t = jax.random.randint(k_pt, (batch,), 0, ent_size)
    neg_h = jax.random.randint(k_nh, (batch,), 0, ent_size)
    neg_r = pos_r                       # typical negative sampling keeps the relation
    neg_t = jax.random.randint(k_nt, (batch,), 0, ent_size)
    take = jax.random.bernoulli(k_take, 0.7, (batch,))
    return (pos_h, pos_r, pos_t), (neg_h, neg_r, neg_t), take


if __name__ == "__main__":
    ENT_SIZE, REL_SIZE, LATENT_DIM, MARGIN = 50, 20, 32, 1.0

    key = jax.random.PRNGKey(0)
    k_ent, k_rel, k_nrm, k_b1, k_b2 = jax.random.split(key, 5)

    ent_emb = _xavier_uniform(k_ent, (ENT_SIZE, LATENT_DIM))
    rel_emb = _xavier_uniform(k_rel, (REL_SIZE, LATENT_DIM))
    norm_vector = _xavier_uniform(k_nrm, (REL_SIZE, LATENT_DIM))

    # --- case 1: small batch, single 128-lane tile, in-kernel gather path ----
    pos, neg, take = _make_batch(k_b1, 8, ENT_SIZE, REL_SIZE)
    loss, neg_score = transh_discriminator_forward(
        ent_emb, rel_emb, norm_vector, pos, neg, take, MARGIN)
    jax.block_until_ready((loss, neg_score))
    ref_loss, ref_neg = _reference_forward(
        ent_emb, rel_emb, norm_vector, pos, neg, take, MARGIN)
    assert jnp.allclose(loss, ref_loss, atol=1e-2, rtol=1e-3), (loss, ref_loss)
    assert jnp.allclose(neg_score, ref_neg, atol=1e-3, rtol=1e-3)

    # --- case 2: larger batch -> padding + multi-tile parallel grid ----------
    pos2, neg2, take2 = _make_batch(k_b2, 272, ENT_SIZE, REL_SIZE)
    loss2, neg_score2 = transh_discriminator_forward(
        ent_emb, rel_emb, norm_vector, pos2, neg2, take2, MARGIN)
    jax.block_until_ready((loss2, neg_score2))
    ref_loss2, ref_neg2 = _reference_forward(
        ent_emb, rel_emb, norm_vector, pos2, neg2, take2, MARGIN)
    assert jnp.allclose(loss2, ref_loss2, atol=1e-2, rtol=1e-3), (loss2, ref_loss2)
    assert jnp.allclose(neg_score2, ref_neg2, atol=1e-3, rtol=1e-3)

    # --- case 3: force the large-table fallback (XLA gather + bf16 slab) -----
    loss3, neg_score3 = transh_discriminator_forward(
        ent_emb, rel_emb, norm_vector, pos2, neg2, take2, MARGIN,
        max_gather_rows=0)
    jax.block_until_ready((loss3, neg_score3))
    # compare against a bf16-quantized reference (gather commutes with the cast)
    ent_q = ent_emb.astype(jnp.bfloat16).astype(jnp.float32)
    rel_q = rel_emb.astype(jnp.bfloat16).astype(jnp.float32)
    nrm_q = norm_vector.astype(jnp.bfloat16).astype(jnp.float32)
    ref_loss3, ref_neg3 = _reference_forward(
        ent_q, rel_q, nrm_q, pos2, neg2, take2, MARGIN)
    assert jnp.allclose(loss3, ref_loss3, atol=1e-2, rtol=1e-3), (loss3, ref_loss3)
    assert jnp.allclose(neg_score3, ref_neg3, atol=1e-3, rtol=1e-3)

    print("KERNEL_OK")
</pallas_src>

<mosaic_0001>
module attributes {stable_mosaic.version = 11 : i64} {
  func.func @_transh_gather_kernel(%arg0: i32, %arg1: memref<1xf32, #tpu.memory_space<smem>>, %arg2: memref<8x128xi32, #tpu.memory_space<vmem>>, %arg3: memref<1x128xf32, #tpu.memory_space<vmem>>, %arg4: memref<32x56xf32, #tpu.memory_space<vmem>>, %arg5: memref<32x24xf32, #tpu.memory_space<vmem>>, %arg6: memref<32x24xf32, #tpu.memory_space<vmem>>, %arg7: memref<2x128xf32, #tpu.memory_space<vmem>>) attributes {dimension_semantics = [#tpu.dimension_semantics<parallel>], iteration_bounds = array<i64: 1>, scalar_prefetch = 0 : i64, scratch_operands = 0 : i64, tpu.core_type = #tpu.core_type<tc>, window_params = [{transform_indices = @transform_0, window_bounds = array<i64: 1>}, {transform_indices = @transform_1, window_bounds = array<i64: 8, 128>}, {transform_indices = @transform_2, window_bounds = array<i64: 1, 128>}, {pipeline_mode = #tpu.pipeline_mode<synchronous>, transform_indices = @transform_3, window_bounds = array<i64: 32, 56>}, {pipeline_mode = #tpu.pipeline_mode<synchronous>, transform_indices = @transform_4, window_bounds = array<i64: 32, 24>}, {pipeline_mode = #tpu.pipeline_mode<synchronous>, transform_indices = @transform_5, window_bounds = array<i64: 32, 24>}, {transform_indices = @transform_6, window_bounds = array<i64: 2, 128>}]} {
    %c0 = arith.constant 0 : index
    %0 = memref.load %arg1[%c0] : memref<1xf32, #tpu.memory_space<smem>>
    %c5 = arith.constant 5 : index
    %c0_0 = arith.constant 0 : index
    %1 = vector.load %arg2[%c5, %c0_0] : memref<8x128xi32, #tpu.memory_space<vmem>>, vector<1x128xi32>
    %2 = tpu.iota {dimensions = array<i32: 0>} : vector<24x128xi32>
    %3 = vector.broadcast %1 : vector<1x128xi32> to vector<24x128xi32>
    %4 = arith.cmpi eq, %2, %3 : vector<24x128xi32>
    %5 = arith.extui %4 : vector<24x128xi1> to vector<24x128xi32>
    %6 = arith.sitofp %5 : vector<24x128xi32> to vector<24x128xf32>
    %c3 = arith.constant 3 : index
    %c0_1 = arith.constant 0 : index
    %7 = vector.load %arg2[%c3, %c0_1] : memref<8x128xi32, #tpu.memory_space<vmem>>, vector<1x128xi32>
    %8 = tpu.iota {dimensions = array<i32: 0>} : vector<56x128xi32>
    %9 = vector.broadcast %7 : vector<1x128xi32> to vector<56x128xi32>
    %10 = arith.cmpi eq, %8, %9 : vector<56x128xi32>
    %11 = arith.extui %10 : vector<56x128xi1> to vector<56x128xi32>
    %12 = arith.sitofp %11 : vector<56x128xi32> to vector<56x128xf32>
    %c0_2 = arith.constant 0 : index
    %c0_3 = arith.constant 0 : index
    %13 = vector.load %arg4[%c0_2, %c0_3] : memref<32x56xf32, #tpu.memory_space<vmem>>, vector<32x56xf32>
    %cst = arith.constant dense<0.000000e+00> : vector<32x128xf32>
    %14 = tpu.matmul %13, %12, %cst {dimension_numbers = #tpu.dot_dimension_numbers<[1], [0], [0], [1], [0, 0, 1, 1], [], []>} : vector<32x56xf32>, vector<56x128xf32>, vector<32x128xf32> -> vector<32x128xf32>
    %c4 = arith.constant 4 : index
    %c0_4 = arith.constant 0 : index
    %15 = vector.load %arg2[%c4, %c0_4] : memref<8x128xi32, #tpu.memory_space<vmem>>, vector<1x128xi32>
    %16 = tpu.iota {dimensions = array<i32: 0>} : vector<56x128xi32>
    %17 = vector.broadcast %15 : vector<1x128xi32> to vector<56x128xi32>
    %18 = arith.cmpi eq, %16, %17 : vector<56x128xi32>
    %19 = arith.extui %18 : vector<56x128xi1> to vector<56x128xi32>
    %20 = arith.sitofp %19 : vector<56x128xi32> to vector<56x128xf32>
    %c0_5 = arith.constant 0 : index
    %c0_6 = arith.constant 0 : index
    %21 = vector.load %arg4[%c0_5, %c0_6] : memref<32x56xf32, #tpu.memory_space<vmem>>, vector<32x56xf32>
    %cst_7 = arith.constant dense<0.000000e+00> : vector<32x128xf32>
    %22 = tpu.matmul %21, %20, %cst_7 {dimension_numbers = #tpu.dot_dimension_numbers<[1], [0], [0], [1], [0, 0, 1, 1], [], []>} : vector<32x56xf32>, vector<56x128xf32>, vector<32x128xf32> -> vector<32x128xf32>
    %c0_8 = arith.constant 0 : index
    %c0_9 = arith.constant 0 : index
    %23 = vector.load %arg5[%c0_8, %c0_9] : memref<32x24xf32, #tpu.memory_space<vmem>>, vector<32x24xf32>
    %cst_10 = arith.constant dense<0.000000e+00> : vector<32x128xf32>
    %24 = tpu.matmul %23, %6, %cst_10 {dimension_numbers = #tpu.dot_dimension_numbers<[1], [0], [0], [1], [0, 0, 1, 1], [], []>} : vector<32x24xf32>, vector<24x128xf32>, vector<32x128xf32> -> vector<32x128xf32>
    %c0_11 = arith.constant 0 : index
    %c0_12 = arith.constant 0 : index
    %25 = vector.load %arg6[%c0_11, %c0_12] : memref<32x24xf32, #tpu.memory_space<vmem>>, vector<32x24xf32>
    %cst_13 = arith.constant dense<0.000000e+00> : vector<32x128xf32>
    %26 = tpu.matmul %25, %6, %cst_13 {dimension_numbers = #tpu.dot_dimension_numbers<[1], [0], [0], [1], [0, 0, 1, 1], [], []>} : vector<32x24xf32>, vector<24x128xf32>, vector<32x128xf32> -> vector<32x128xf32>
    %27 = arith.mulf %26, %26 : vector<32x128xf32>
    %cst_14 = arith.constant dense<0.000000e+00> : vector<128xf32>
    %28 = vector.multi_reduction <add>, %27, %cst_14 [0] : vector<32x128xf32> to vector<128xf32>
    %29 = vector.shape_cast %28 : vector<128xf32> to vector<1x128xf32>
    %cst_15 = arith.constant 1.000000e-24 : f32
    %30 = vector.broadcast %cst_15 : f32 to vector<1x128xf32>
    %31 = arith.maximumf %29, %30 : vector<1x128xf32>
    %32 = math.rsqrt %31 : vector<1x128xf32>
    %33 = vector.broadcast %32 : vector<1x128xf32> to vector<32x128xf32>
    %34 = arith.mulf %26, %33 : vector<32x128xf32>
    %35 = arith.mulf %14, %14 : vector<32x128xf32>
    %cst_16 = arith.constant dense<0.000000e+00> : vector<128xf32>
    %36 = vector.multi_reduction <add>, %35, %cst_16 [0] : vector<32x128xf32> to vector<128xf32>
    %37 = vector.shape_cast %36 : vector<128xf32> to vector<1x128xf32>
    %cst_17 = arith.constant 1.000000e-24 : f32
    %38 = vector.broadcast %cst_17 : f32 to vector<1x128xf32>
    %39 = arith.maximumf %37, %38 : vector<1x128xf32>
    %40 = math.rsqrt %39 : vector<1x128xf32>
    %41 = vector.broadcast %40 : vector<1x128xf32> to vector<32x128xf32>
    %42 = arith.mulf %14, %41 : vector<32x128xf32>
    %43 = arith.mulf %42, %34 : vector<32x128xf32>
    %cst_18 = arith.constant dense<0.000000e+00> : vector<128xf32>
    %44 = vector.multi_reduction <add>, %43, %cst_18 [0] : vector<32x128xf32> to vector<128xf32>
    %45 = vector.shape_cast %44 : vector<128xf32> to vector<1x128xf32>
    %46 = vector.broadcast %45 : vector<1x128xf32> to vector<32x128xf32>
    %47 = arith.mulf %46, %34 : vector<32x128xf32>
    %48 = arith.subf %42, %47 : vector<32x128xf32>
    %49 = arith.mulf %22, %22 : vector<32x128xf32>
    %cst_19 = arith.constant dense<0.000000e+00> : vector<128xf32>
    %50 = vector.multi_reduction <add>, %49, %cst_19 [0] : vector<32x128xf32> to vector<128xf32>
    %51 = vector.shape_cast %50 : vector<128xf32> to vector<1x128xf32>
    %cst_20 = arith.constant 1.000000e-24 : f32
    %52 = vector.broadcast %cst_20 : f32 to vector<1x128xf32>
    %53 = arith.maximumf %51, %52 : vector<1x128xf32>
    %54 = math.rsqrt %53 : vector<1x128xf32>
    %55 = vector.broadcast %54 : vector<1x128xf32> to vector<32x128xf32>
    %56 = arith.mulf %22, %55 : vector<32x128xf32>
    %57 = arith.mulf %56, %34 : vector<32x128xf32>
    %cst_21 = arith.constant dense<0.000000e+00> : vector<128xf32>
    %58 = vector.multi_reduction <add>, %57, %cst_21 [0] : vector<32x128xf32> to vector<128xf32>
    %59 = vector.shape_cast %58 : vector<128xf32> to vector<1x128xf32>
    %60 = vector.broadcast %59 : vector<1x128xf32> to vector<32x128xf32>
    %61 = arith.mulf %60, %34 : vector<32x128xf32>
    %62 = arith.subf %56, %61 : vector<32x128xf32>
    %63 = arith.mulf %24, %24 : vector<32x128xf32>
    %cst_22 = arith.constant dense<0.000000e+00> : vector<128xf32>
    %64 = vector.multi_reduction <add>, %63, %cst_22 [0] : vector<32x128xf32> to vector<128xf32>
    %65 = vector.shape_cast %64 : vector<128xf32> to vector<1x128xf32>
    %cst_23 = arith.constant 1.000000e-24 : f32
    %66 = vector.broadcast %cst_23 : f32 to vector<1x128xf32>
    %67 = arith.maximumf %65, %66 : vector<1x128xf32>
    %68 = math.rsqrt %67 : vector<1x128xf32>
    %69 = vector.broadcast %68 : vector<1x128xf32> to vector<32x128xf32>
    %70 = arith.mulf %24, %69 : vector<32x128xf32>
    %71 = arith.addf %48, %70 : vector<32x128xf32>
    %72 = arith.subf %71, %62 : vector<32x128xf32>
    %73 = math.absf %72 : vector<32x128xf32>
    %cst_24 = arith.constant dense<0.000000e+00> : vector<128xf32>
    %74 = vector.multi_reduction <add>, %73, %cst_24 [0] : vector<32x128xf32> to vector<128xf32>
    %75 = vector.shape_cast %74 : vector<128xf32> to vector<1x128xf32>
    %c2 = arith.constant 2 : index
    %c0_25 = arith.constant 0 : index
    %76 = vector.load %arg2[%c2, %c0_25] : memref<8x128xi32, #tpu.memory_space<vmem>>, vector<1x128xi32>
    %77 = tpu.iota {dimensions = array<i32: 0>} : vector<24x128xi32>
    %78 = vector.broadcast %76 : vector<1x128xi32> to vector<24x128xi32>
    %79 = arith.cmpi eq, %77, %78 : vector<24x128xi32>
    %80 = arith.extui %79 : vector<24x128xi1> to vector<24x128xi32>
    %81 = arith.sitofp %80 : vector<24x128xi32> to vector<24x128xf32>
    %c0_26 = arith.constant 0 : index
    %c0_27 = arith.constant 0 : index
    %82 = vector.load %arg2[%c0_26, %c0_27] : memref<8x128xi32, #tpu.memory_space<vmem>>, vector<1x128xi32>
    %83 = tpu.iota {dimensions = array<i32: 0>} : vector<56x128xi32>
    %84 = vector.broadcast %82 : vector<1x128xi32> to vector<56x128xi32>
    %85 = arith.cmpi eq, %83, %84 : vector<56x128xi32>
    %86 = arith.extui %85 : vector<56x128xi1> to vector<56x128xi32>
    %87 = arith.sitofp %86 : vector<56x128xi32> to vector<56x128xf32>
    %c0_28 = arith.constant 0 : index
    %c0_29 = arith.constant 0 : index
    %88 = vector.load %arg4[%c0_28, %c0_29] : memref<32x56xf32, #tpu.memory_space<vmem>>, vector<32x56xf32>
    %cst_30 = arith.constant dense<0.000000e+00> : vector<32x128xf32>
    %89 = tpu.matmul %88, %87, %cst_30 {dimension_numbers = #tpu.dot_dimension_numbers<[1], [0], [0], [1], [0, 0, 1, 1], [], []>} : vector<32x56xf32>, vector<56x128xf32>, vector<32x128xf32> -> vector<32x128xf32>
    %c1 = arith.constant 1 : index
    %c0_31 = arith.constant 0 : index
    %90 = vector.load %arg2[%c1, %c0_31] : memref<8x128xi32, #tpu.memory_space<vmem>>, vector<1x128xi32>
    %91 = tpu.iota {dimensions = array<i32: 0>} : vector<56x128xi32>
    %92 = vector.broadcast %90 : vector<1x128xi32> to vector<56x128xi32>
    %93 = arith.cmpi eq, %91, %92 : vector<56x128xi32>
    %94 = arith.extui %93 : vector<56x128xi1> to vector<56x128xi32>
    %95 = arith.sitofp %94 : vector<56x128xi32> to vector<56x128xf32>
    %c0_32 = arith.constant 0 : index
    %c0_33 = arith.constant 0 : index
    %96 = vector.load %arg4[%c0_32, %c0_33] : memref<32x56xf32, #tpu.memory_space<vmem>>, vector<32x56xf32>
    %cst_34 = arith.constant dense<0.000000e+00> : vector<32x128xf32>
    %97 = tpu.matmul %96, %95, %cst_34 {dimension_numbers = #tpu.dot_dimension_numbers<[1], [0], [0], [1], [0, 0, 1, 1], [], []>} : vector<32x56xf32>, vector<56x128xf32>, vector<32x128xf32> -> vector<32x128xf32>
    %c0_35 = arith.constant 0 : index
    %c0_36 = arith.constant 0 : index
    %98 = vector.load %arg5[%c0_35, %c0_36] : memref<32x24xf32, #tpu.memory_space<vmem>>, vector<32x24xf32>
    %cst_37 = arith.constant dense<0.000000e+00> : vector<32x128xf32>
    %99 = tpu.matmul %98, %81, %cst_37 {dimension_numbers = #tpu.dot_dimension_numbers<[1], [0], [0], [1], [0, 0, 1, 1], [], []>} : vector<32x24xf32>, vector<24x128xf32>, vector<32x128xf32> -> vector<32x128xf32>
    %c0_38 = arith.constant 0 : index
    %c0_39 = arith.constant 0 : index
    %100 = vector.load %arg6[%c0_38, %c0_39] : memref<32x24xf32, #tpu.memory_space<vmem>>, vector<32x24xf32>
    %cst_40 = arith.constant dense<0.000000e+00> : vector<32x128xf32>
    %101 = tpu.matmul %100, %81, %cst_40 {dimension_numbers = #tpu.dot_dimension_numbers<[1], [0], [0], [1], [0, 0, 1, 1], [], []>} : vector<32x24xf32>, vector<24x128xf32>, vector<32x128xf32> -> vector<32x128xf32>
    %102 = arith.mulf %101, %101 : vector<32x128xf32>
    %cst_41 = arith.constant dense<0.000000e+00> : vector<128xf32>
    %103 = vector.multi_reduction <add>, %102, %cst_41 [0] : vector<32x128xf32> to vector<128xf32>
    %104 = vector.shape_cast %103 : vector<128xf32> to vector<1x128xf32>
    %cst_42 = arith.constant 1.000000e-24 : f32
    %105 = vector.broadcast %cst_42 : f32 to vector<1x128xf32>
    %106 = arith.maximumf %104, %105 : vector<1x128xf32>
    %107 = math.rsqrt %106 : vector<1x128xf32>
    %108 = vector.broadcast %107 : vector<1x128xf32> to vector<32x128xf32>
    %109 = arith.mulf %101, %108 : vector<32x128xf32>
    %110 = arith.mulf %89, %89 : vector<32x128xf32>
    %cst_43 = arith.constant dense<0.000000e+00> : vector<128xf32>
    %111 = vector.multi_reduction <add>, %110, %cst_43 [0] : vector<32x128xf32> to vector<128xf32>
    %112 = vector.shape_cast %111 : vector<128xf32> to vector<1x128xf32>
    %cst_44 = arith.constant 1.000000e-24 : f32
    %113 = vector.broadcast %cst_44 : f32 to vector<1x128xf32>
    %114 = arith.maximumf %112, %113 : vector<1x128xf32>
    %115 = math.rsqrt %114 : vector<1x128xf32>
    %116 = vector.broadcast %115 : vector<1x128xf32> to vector<32x128xf32>
    %117 = arith.mulf %89, %116 : vector<32x128xf32>
    %118 = arith.mulf %117, %109 : vector<32x128xf32>
    %cst_45 = arith.constant dense<0.000000e+00> : vector<128xf32>
    %119 = vector.multi_reduction <add>, %118, %cst_45 [0] : vector<32x128xf32> to vector<128xf32>
    %120 = vector.shape_cast %119 : vector<128xf32> to vector<1x128xf32>
    %121 = vector.broadcast %120 : vector<1x128xf32> to vector<32x128xf32>
    %122 = arith.mulf %121, %109 : vector<32x128xf32>
    %123 = arith.subf %117, %122 : vector<32x128xf32>
    %124 = arith.mulf %97, %97 : vector<32x128xf32>
    %cst_46 = arith.constant dense<0.000000e+00> : vector<128xf32>
    %125 = vector.multi_reduction <add>, %124, %cst_46 [0] : vector<32x128xf32> to vector<128xf32>
    %126 = vector.shape_cast %125 : vector<128xf32> to vector<1x128xf32>
    %cst_47 = arith.constant 1.000000e-24 : f32
    %127 = vector.broadcast %cst_47 : f32 to vector<1x128xf32>
    %128 = arith.maximumf %126, %127 : vector<1x128xf32>
    %129 = math.rsqrt %128 : vector<1x128xf32>
    %130 = vector.broadcast %129 : vector<1x128xf32> to vector<32x128xf32>
    %131 = arith.mulf %97, %130 : vector<32x128xf32>
    %132 = arith.mulf %131, %109 : vector<32x128xf32>
    %cst_48 = arith.constant dense<0.000000e+00> : vector<128xf32>
    %133 = vector.multi_reduction <add>, %132, %cst_48 [0] : vector<32x128xf32> to vector<128xf32>
    %134 = vector.shape_cast %133 : vector<128xf32> to vector<1x128xf32>
    %135 = vector.broadcast %134 : vector<1x128xf32> to vector<32x128xf32>
    %136 = arith.mulf %135, %109 : vector<32x128xf32>
    %137 = arith.subf %131, %136 : vector<32x128xf32>
    %138 = arith.mulf %99, %99 : vector<32x128xf32>
    %cst_49 = arith.constant dense<0.000000e+00> : vector<128xf32>
    %139 = vector.multi_reduction <add>, %138, %cst_49 [0] : vector<32x128xf32> to vector<128xf32>
    %140 = vector.shape_cast %139 : vector<128xf32> to vector<1x128xf32>
    %cst_50 = arith.constant 1.000000e-24 : f32
    %141 = vector.broadcast %cst_50 : f32 to vector<1x128xf32>
    %142 = arith.maximumf %140, %141 : vector<1x128xf32>
    %143 = math.rsqrt %142 : vector<1x128xf32>
    %144 = vector.broadcast %143 : vector<1x128xf32> to vector<32x128xf32>
    %145 = arith.mulf %99, %144 : vector<32x128xf32>
    %146 = arith.addf %123, %145 : vector<32x128xf32>
    %147 = arith.subf %146, %137 : vector<32x128xf32>
    %148 = math.absf %147 : vector<32x128xf32>
    %cst_51 = arith.constant dense<0.000000e+00> : vector<128xf32>
    %149 = vector.multi_reduction <add>, %148, %cst_51 [0] : vector<32x128xf32> to vector<128xf32>
    %150 = vector.shape_cast %149 : vector<128xf32> to vector<1x128xf32>
    %151 = arith.subf %150, %75 : vector<1x128xf32>
    %152 = vector.broadcast %0 : f32 to vector<1x128xf32>
    %153 = arith.addf %151, %152 : vector<1x128xf32>
    %cst_52 = arith.constant 0.000000e+00 : f32
    %154 = vector.broadcast %cst_52 : f32 to vector<1x128xf32>
    %155 = arith.maximumf %153, %154 : vector<1x128xf32>
    %c0_53 = arith.constant 0 : index
    %c0_54 = arith.constant 0 : index
    %156 = vector.load %arg3[%c0_53, %c0_54] : memref<1x128xf32, #tpu.memory_space<vmem>>, vector<1x128xf32>
    %157 = arith.mulf %155, %156 : vector<1x128xf32>
    %c0_55 = arith.constant 0 : index
    %c0_56 = arith.constant 0 : index
    %158 = vector.load %arg7[%c0_55, %c0_56] : memref<2x128xf32, #tpu.memory_space<vmem>>, vector<1x128xf32>
    tpu.vector_store %arg7[%c0_55, %c0_56], %157 {strides = array<i32>} : memref<2x128xf32, #tpu.memory_space<vmem>>, vector<1x128xf32>,
    %cst_57 = arith.constant 0.000000e+00 : f32
    %159 = vector.broadcast %cst_57 : f32 to vector<1x128xf32>
    %160 = arith.subf %159, %75 : vector<1x128xf32>
    %c1_58 = arith.constant 1 : index
    %c0_59 = arith.constant 0 : index
    %161 = vector.load %arg7[%c1_58, %c0_59] : memref<2x128xf32, #tpu.memory_space<vmem>>, vector<1x128xf32>
    tpu.vector_store %arg7[%c1_58, %c0_59], %160 {strides = array<i32>} : memref<2x128xf32, #tpu.memory_space<vmem>>, vector<1x128xf32>,
    return
  }
  func.func @transform_0(%arg0: i32) -> i32 {
    %c0_i32 = arith.constant 0 : i32
    %c0_i32_0 = arith.constant 0 : i32
    return %c0_i32 : i32
  }
  func.func @transform_1(%arg0: i32) -> (i32, i32) {
    %c0_i32 = arith.constant 0 : i32
    %c0_i32_0 = arith.constant 0 : i32
    return %c0_i32, %arg0 : i32, i32
  }
  func.func @transform_2(%arg0: i32) -> (i32, i32) {
    %c0_i32 = arith.constant 0 : i32
    %c0_i32_0 = arith.constant 0 : i32
    return %c0_i32, %arg0 : i32, i32
  }
  func.func @transform_3(%arg0: i32) -> (i32, i32) {
    %c0_i32 = arith.constant 0 : i32
    %c0_i32_0 = arith.constant 0 : i32
    %c0_i32_1 = arith.constant 0 : i32
    return %c0_i32, %c0_i32_0 : i32, i32
  }
  func.func @transform_4(%arg0: i32) -> (i32, i32) {
    %c0_i32 = arith.constant 0 : i32
    %c0_i32_0 = arith.constant 0 : i32
    %c0_i32_1 = arith.constant 0 : i32
    return %c0_i32, %c0_i32_0 : i32, i32
  }
  func.func @transform_5(%arg0: i32) -> (i32, i32) {
    %c0_i32 = arith.constant 0 : i32
    %c0_i32_0 = arith.constant 0 : i32
    %c0_i32_1 = arith.constant 0 : i32
    return %c0_i32, %c0_i32_0 : i32, i32
  }
  func.func @transform_6(%arg0: i32) -> (i32, i32) {
    %c0_i32 = arith.constant 0 : i32
    %c0_i32_0 = arith.constant 0 : i32
    return %c0_i32, %arg0 : i32, i32
  }
}

</mosaic_0001>

<bundles_post_ra>
// kernel: tpu_custom_call.1
= control target key start
LH: loop header
LB: loop body
LE: loop exit
PB: predicated region body
PF: predicated region fallthrough
CT: control target
= control target key end

     0   :  { %v27_v0 = vlaneseq  ;;  %vm78_vm0 = vcmask 457728   ;;  %s2219_s0 = inlined_call_operand.<no memory space> [shape: f32[1], index: 0, kind: input, shape index: {}]   ;;  %s2220_s1 = inlined_call_operand.vmem [shape: s32[8,128], index: 1, kind: input, shape index: {}]   ;;  %s2221_s2 = inlined_call_operand.vmem [shape: f32[1,128], index: 2, kind: input, shape index: {}]   ;;  %s2222_s3 = inlined_call_operand.vmem [shape: f32[32,56], index: 3, kind: input, shape index: {}]   ;;  %s2223_s4 = inlined_call_operand.vmem [shape: f32[32,24], index: 4, kind: input, shape index: {}]   ;;  %s2224_s5 = inlined_call_operand.vmem [shape: f32[32,24], index: 5, kind: input, shape index: {}]   ;;  %s2225_s6 = inlined_call_operand.hbm [shape: f32[2,128], index: 6, kind: output, shape index: {}]  }
   0x1   :  { %v1201_v1 = vld [vmem:[%s2220_s1 + $0x3] ss:$0 sm:$0xff]  ;;  %v1220_v4 = vld [vmem:[%s2220_s1 + $0x4] ss:$0 sm:$0xff] }
   0x2   :  { %v1660_v2 = vld [vmem:[%s2222_s3] sm:$0xff]  ;;  %v1662_v3 = vshrl.u32 %v27_v0, 7 }
   0x3   :  { %1395 = vmatprep.mubr.msk.f32.mxu0 %vm78_vm0, %v1660_v2  ;;  %1415 = vmatprep.mubr.msk.f32.mxu1 %vm78_vm0, %v1660_v2 }
   0x4   :  { %v1672_v5 = vadd.s32 8, %v1662_v3  ;;  %vm53_vm1 = vcmp.eq.s32.totalorder %v1662_v3, %v1201_v1  ;;  %v1676_v6 = vadd.s32 16, %v1662_v3  ;;  %vm181_vm2 = vcmp.eq.s32.totalorder %v1662_v3, %v1220_v4 }
   0x5   :  { %v1680_v7 = vadd.s32 24, %v1662_v3  ;;  %v1683_v8 = vadd.s32 32, %v1662_v3  ;;  %v1686_v9 = vadd.s32 40, %v1662_v3 }
   0x6   :  { %vm54_vm3 = vcmp.eq.s32.totalorder %v1672_v5, %v1201_v1  ;;  %vm182_vm4 = vcmp.eq.s32.totalorder %v1672_v5, %v1220_v4  ;;  %vm55_vm5 = vcmp.eq.s32.totalorder %v1676_v6, %v1201_v1 }
   0x7   :  { %12 = vsyncpa [#allocation4], 0  ;;  %vm56_vm7 = vcmp.eq.s32.totalorder %v1680_v7, %v1201_v1  ;;  %vm183_vm8 = vcmp.eq.s32.totalorder %v1676_v6, %v1220_v4  ;;  %vm184_vm9 = vcmp.eq.s32.totalorder %v1680_v7, %v1220_v4  ;;  %v1616_v10 = vmov 1.0|1.0   ;;  %v1197_v12 = vld [vmem:[%s2220_s1 + $0x5] ss:$0 sm:$0xff] }
   0x8   :  { %vm1509_vm6 = vmpackc.low %vm54_vm3, %vm53_vm1  ;;  %vm57_vm11 = vcmp.eq.s32.totalorder %v1683_v8, %v1201_v1  ;;  %vm58_vm12 = vcmp.eq.s32.totalorder %v1686_v9, %v1201_v1  ;;  %vm185_vm14 = vcmp.eq.s32.totalorder %v1683_v8, %v1220_v4  ;;  %vm186_vm15 = vcmp.eq.s32.totalorder %v1686_v9, %v1220_v4  ;;  %v1725_v14 = vld [vmem:[%s2222_s3 + $0x8] sm:$0xff]  ;;  %v1731_v15 = vld [vmem:[%s2220_s1] ss:$0 sm:$0xff]  ;;  %s1618_s9 = smov [#allocation3]  }
   0x9   :  { %1510 = vmatprep.subr.msk.bf16.mxu0 %vm1509_vm6, %v1616_v10  ;;  %vm1521_vm10 = vmpackc.low %vm182_vm4, %vm181_vm2  ;;  %v1705_v11 = vadd.s32 48, %v1662_v3  ;;  %v1617_v13 = vmov 1.0   ;;  %v1739_v16 = vld [vmem:[%s2222_s3 + $0x10] sm:$0xff]  ;;  %v1744_v17 = vld [vmem:[%s2220_s1 + $0x1] ss:$0 sm:$0xff]  ;;  %s1189_s10 = sshll.u32 %s1618_s9, 4  ;;  %s1190_s10 = int_to_ptr.vmem [resolvable:$true] %s1189_s10 }
   0xa   :  { %1522 = vmatprep.subr.msk.bf16.mxu1 %vm1521_vm10, %v1616_v10  ;;  %1512 = vmatpush3.bf16.msk.msra.mxu0 %vm1509_vm6, %v1616_v10  ;;  %vm1513_vm13 = vmpackc.low %vm56_vm7, %vm55_vm5  ;;  %vm35_vm6 = vcmp.eq.s32.totalorder %v1662_v3, %v1197_v12  ;;  %vm36_vm7 = vcmp.eq.s32.totalorder %v1672_v5, %v1197_v12  ;;  %v1752_v18 = vld [vmem:[%s2222_s3 + $0x18] sm:$0xff]  ;;  %v1775_v19 = vld [vmem:[%s2223_s4] sm:$0xff]  ;;  %s1592_s11 = scalar_lea.vmem %s1190_s10, 32  ;;  %p1597_p1 = scmp.lt.s32.totalorder %s1190_s10, %s1190_s10 }
   0xb   :  { %1524 = vmatpush3.bf16.msk.msra.mxu1 %vm1521_vm10, %v1616_v10  ;;  %1514 = vmatprep.subr.msk.bf16.mxu0 %vm1513_vm13, %v1616_v10  ;;  %vm1525_vm1 = vmpackc.low %vm184_vm9, %vm183_vm8  ;;  %vm59_vm4 = vcmp.eq.s32.totalorder %v1705_v11, %v1201_v1  ;;  %vm187_vm5 = vcmp.eq.s32.totalorder %v1705_v11, %v1220_v4  ;;  %vm37_vm9 = vcmp.eq.s32.totalorder %v1676_v6, %v1197_v12  ;;  %v1785_v20 = vld [vmem:[%s2224_s5] sm:$0xff]  ;;  %v1804_v23 = vld [vmem:[%s2223_s4 + $0x8] sm:$0xff]  ;;  %p1593_p0 = scmp.ne.s32.totalorder %s1190_s10, %s1592_s11  ;;  %p1598_p2 = scmp.lt.s32.totalorder %s1592_s11, %s1592_s11 }
   0xc   :  { %1526 = vmatprep.subr.msk.bf16.mxu1 %vm1525_vm1, %v1616_v10  ;;  %vm1517_vm2 = vmpackc.low %vm58_vm12, %vm57_vm11  ;;  %vm648_vm10 = vcmp.eq.s32.totalorder %v1662_v3, %v1731_v15  ;;  %vm649_vm11 = vcmp.eq.s32.totalorder %v1672_v5, %v1731_v15  ;;  %vm759_vm12 = vcmp.eq.s32.totalorder %v1662_v3, %v1744_v17  ;;  %v1818_v24 = vld [vmem:[%s2224_s5 + $0x8] sm:$0xff]  ;;  %v289_v25 = vld [vmem:[%s2223_s4 + $0x10] sm:$0xff] }
   0xd   :  { %vm1529_vm3 = vmpackc.low %vm186_vm15, %vm185_vm14  ;;  %vm291_vm14 = vcmask 195584   ;;  %v391_v26 = vld [vmem:[%s2224_s5 + $0x10] sm:$0xff]  ;;  %v290_v28 = vld [vmem:[%s2223_s4 + $0x18] sm:$0xff]  ;;  %p1599_p3 = por %p1598_p2, %p1597_p1 }
   0xe   :  { %1516 = vmatpush3.bf16.msk.msra.mxu0 %vm1513_vm13, %v1616_v10  ;;  %vm1533_vm8 = vmpackc.low %vm36_vm7, %vm35_vm6  ;;  %vm760_vm13 = vcmp.eq.s32.totalorder %v1672_v5, %v1744_v17  ;;  %vm652_vm7 = vcmp.eq.s32.totalorder %v1683_v8, %v1731_v15  ;;  %v392_v29 = vld [vmem:[%s2224_s5 + $0x18] sm:$0xff]  ;;  %v1253_v30 = vld [vmem:[%s2220_s1 + $0x2] ss:$0 sm:$0xff] }
   0xf   :  { %1528 = vmatpush3.bf16.msk.msra.mxu1 %vm1525_vm1, %v1616_v10  ;;  %1518 = vmatprep.subr.msk.bf16.mxu0 %vm1517_vm2, %v1616_v10  ;;  %vm1787_vm15 = vmpackc.low %vm649_vm11, %vm648_vm10  ;;  %vm763_vm10 = vcmp.eq.s32.totalorder %v1683_v8, %v1744_v17  ;;  %vm764_vm11 = vcmp.eq.s32.totalorder %v1686_v9, %v1744_v17  ;;  %p1600_p4 = pnand %p1599_p3, %p1593_p0 }
  0x10   :  { %1530 = vmatprep.subr.msk.bf16.mxu1 %vm1529_vm3, %v1616_v10  ;;  %vm1797_vm1 = vmpackc.low %vm760_vm13, %vm759_vm12 }
  0x11   :  { %vm1561_vm13 = vmpackc.low %vm764_vm11, %vm763_vm10 }
  0x12   :  { %1520 = vmatpush3.bf16.msk.msra.mxu0 %vm1517_vm2, %v1616_v10  ;;  %vm650_vm2 = vcmp.eq.s32.totalorder %v1676_v6, %v1731_v15 }
  0x13   :  { %1532 = vmatpush3.bf16.msk.msra.mxu1 %vm1529_vm3, %v1616_v10  ;;  %1393 = vmatprep.subr.msk.mxu0 %vm59_vm4, %v1617_v13  ;;  %vm651_vm3 = vcmp.eq.s32.totalorder %v1680_v7, %v1731_v15 }
  0x14   :  { %1413 = vmatprep.subr.msk.mxu1 %vm187_vm5, %v1617_v13  ;;  %vm1840_vm6 = vmpackc.low %vm651_vm3, %vm650_vm2  ;;  %vm634_vm2 = vcmp.eq.s32.totalorder %v1662_v3, %v1253_v30  ;;  %vm635_vm3 = vcmp.eq.s32.totalorder %v1672_v5, %v1253_v30 }
  0x16   :  { %1394 = vmatpush3.msk.msra.mxu0 %vm59_vm4, %v1617_v13  ;;  %vm761_vm4 = vcmp.eq.s32.totalorder %v1676_v6, %v1744_v17 }
  0x17   :  { %1414 = vmatpush3.msk.msra.mxu1 %vm187_vm5, %v1617_v13  ;;  %1396 = vmatmul.mubr.msk.f32.vlgmr.msra.gmra.mrb[0].mxu0 %vm78_vm0, %v1725_v14  ;;  %vm762_vm5 = vcmp.eq.s32.totalorder %v1680_v7, %v1744_v17 }
  0x18   :  { %1416 = vmatmul.mubr.msk.f32.vlgmr.msra.gmra.mrb[0].mxu1 %vm78_vm0, %v1725_v14  ;;  %1538 = vmatprep.subr.msk.bf16.mxu1 %vm1533_vm8, %v1616_v10 }
  0x19   :  { %1534 = vmatprep.subr.msk.bf16.mxu0 %vm1533_vm8, %v1616_v10  ;;  %1540 = vmatpush3.bf16.msk.msra.mxu1 %vm1533_vm8, %v1616_v10 }
  0x1a   :  { %1536 = vmatpush3.bf16.msk.msra.mxu0 %vm1533_vm8, %v1616_v10  ;;  %1398 = vmatprep.mubr.msk.f32.mxu0 %vm78_vm0, %v1739_v16  ;;  %vm653_vm8 = vcmp.eq.s32.totalorder %v1686_v9, %v1731_v15 }
  0x1b   :  { %1418 = vmatprep.mubr.msk.f32.mxu1 %vm78_vm0, %v1739_v16  ;;  %1399 = vmatmul.mubr.msk.f32.gmra.mrb[2].mxu0 %vm78_vm0, %v1752_v18  ;;  %vm1549_vm12 = vmpackc.low %vm653_vm8, %vm652_vm7 }
  0x1c   :  { %1419 = vmatmul.mubr.msk.f32.gmra.mrb[2].mxu1 %vm78_vm0, %v1752_v18  ;;  %1437 = vmatprep.subr.msk.mxu1 %vm37_vm9, %v1617_v13 }
  0x1d   :  { %1425 = vmatprep.subr.msk.mxu0 %vm37_vm9, %v1617_v13  ;;  %1438 = vmatpush3.msk.msra.mxu1 %vm37_vm9, %v1617_v13 }
  0x1e   :  { %1426 = vmatpush3.msk.msra.mxu0 %vm37_vm9, %v1617_v13  ;;  %1427 = vmatprep.mubr.msk.f32.mxu0 %vm291_vm14, %v1775_v19  ;;  %vm1557_vm9 = vmpackc.low %vm762_vm5, %vm761_vm4  ;;  %vm636_vm5 = vcmp.eq.s32.totalorder %v1676_v6, %v1253_v30 }
  0x1f   :  { %1439 = vmatprep.mubr.msk.f32.mxu1 %vm291_vm14, %v1785_v20  ;;  %1542 = vmatprep.subr.msk.bf16.mxu0 %vm1787_vm15, %v1616_v10  ;;  %vm1565_vm4 = vmpackc.low %vm635_vm3, %vm634_vm2 }
  0x20   :  { %1554 = vmatprep.subr.msk.bf16.mxu1 %vm1797_vm1, %v1616_v10  ;;  %1428 = vmatmul.mubr.msk.f32.vlgmr.msra.gmra.mrb[4].mxu0 %vm291_vm14, %v1804_v23 }
  0x21   :  { %1440 = vmatmul.mubr.msk.f32.vlgmr.msra.gmra.mrb[4].mxu1 %vm291_vm14, %v1818_v24  ;;  %1544 = vmatpush3.bf16.msk.msra.mxu0 %vm1787_vm15, %v1616_v10  ;;  %vm654_vm15 = vcmp.eq.s32.totalorder %v1705_v11, %v1731_v15 }
  0x22   :  { %1556 = vmatpush3.bf16.msk.msra.mxu1 %vm1797_vm1, %v1616_v10  ;;  %1430 = vmatprep.mubr.msk.f32.mxu0 %vm291_vm14, %v289_v25  ;;  %vm765_vm1 = vcmp.eq.s32.totalorder %v1705_v11, %v1744_v17 }
  0x23   :  { %1442 = vmatprep.mubr.msk.f32.mxu1 %vm291_vm14, %v391_v26  ;;  %1546 = vmatprep.subr.msk.bf16.mxu0 %vm1840_vm6, %v1616_v10 }
  0x24   :  { %1558 = vmatprep.subr.msk.bf16.mxu1 %vm1557_vm9, %v1616_v10  ;;  %1431 = vmatmul.mubr.msk.f32.gmra.mrb[6].mxu0 %vm291_vm14, %v290_v28 }
  0x25   :  { %1443 = vmatmul.mubr.msk.f32.gmra.mrb[6].mxu1 %vm291_vm14, %v392_v29  ;;  %1548 = vmatpush3.bf16.msk.msra.mxu0 %vm1840_vm6, %v1616_v10 }
  0x26   :  { %1560 = vmatpush3.bf16.msk.msra.mxu1 %vm1557_vm9, %v1616_v10  ;;  %1550 = vmatprep.subr.msk.bf16.mxu0 %vm1549_vm12, %v1616_v10 }
  0x27   :  { %1562 = vmatprep.subr.msk.bf16.mxu1 %vm1561_vm13, %v1616_v10  ;;  %1459 = vmatprep.mubr.msk.f32.mxu0 %vm78_vm0, %v1660_v2 }
  0x28   :  { %1479 = vmatprep.mubr.msk.f32.mxu1 %vm78_vm0, %v1660_v2 }
  0x29   :  { %1552 = vmatpush3.bf16.msk.msra.mxu0 %vm1549_vm12, %v1616_v10 }
  0x2a   :  { %1564 = vmatpush3.bf16.msk.msra.mxu1 %vm1561_vm13, %v1616_v10  ;;  %1457 = vmatprep.subr.msk.mxu0 %vm654_vm15, %v1617_v13 }
  0x2b   :  { %1477 = vmatprep.subr.msk.mxu1 %vm765_vm1, %v1617_v13 }
  0x2d   :  { %1458 = vmatpush3.msk.msra.mxu0 %vm654_vm15, %v1617_v13 }
  0x2e   :  { %1478 = vmatpush3.msk.msra.mxu1 %vm765_vm1, %v1617_v13  ;;  %1460 = vmatmul.mubr.msk.f32.vlgmr.msra.gmra.mrb[8].mxu0 %vm78_vm0, %v1725_v14 }
  0x2f   :  { %1480 = vmatmul.mubr.msk.f32.vlgmr.msra.gmra.mrb[8].mxu1 %vm78_vm0, %v1725_v14  ;;  %1570 = vmatprep.subr.msk.bf16.mxu1 %vm1565_vm4, %v1616_v10 }
  0x30   :  { %1572 = vmatpush3.bf16.msk.msra.mxu1 %vm1565_vm4, %v1616_v10  ;;  %1566 = vmatprep.subr.msk.bf16.mxu0 %vm1565_vm4, %v1616_v10 }
  0x31   :  { %1462 = vmatprep.mubr.msk.f32.mxu0 %vm78_vm0, %v1739_v16  ;;  %1482 = vmatprep.mubr.msk.f32.mxu1 %vm78_vm0, %v1739_v16 }
  0x32   :  { %1568 = vmatpush3.bf16.msk.msra.mxu0 %vm1565_vm4, %v1616_v10  ;;  %1501 = vmatprep.subr.msk.mxu1 %vm636_vm5, %v1617_v13 }
  0x33   :  { %1463 = vmatmul.mubr.msk.f32.gmra.mrb[10].mxu0 %vm78_vm0, %v1752_v18  ;;  %1483 = vmatmul.mubr.msk.f32.gmra.mrb[10].mxu1 %vm78_vm0, %v1752_v18 }
  0x34   :  { %1502 = vmatpush3.msk.msra.mxu1 %vm636_vm5, %v1617_v13  ;;  %1489 = vmatprep.subr.msk.mxu0 %vm636_vm5, %v1617_v13 }
  0x35   :  { %1491 = vmatprep.mubr.msk.f32.mxu0 %vm291_vm14, %v1775_v19  ;;  %1503 = vmatprep.mubr.msk.f32.mxu1 %vm291_vm14, %v1785_v20 }
  0x36   :  { %1490 = vmatpush3.msk.msra.mxu0 %vm636_vm5, %v1617_v13 }
  0x37   :  { %1492 = vmatmul.mubr.msk.f32.vlgmr.msra.gmra.mrb[12].mxu0 %vm291_vm14, %v1804_v23  ;;  %1504 = vmatmul.mubr.msk.f32.vlgmr.msra.gmra.mrb[12].mxu1 %vm291_vm14, %v1818_v24 }
  0x38   :  { %1494 = vmatprep.mubr.msk.f32.mxu0 %vm291_vm14, %v289_v25  ;;  %1506 = vmatprep.mubr.msk.f32.mxu1 %vm291_vm14, %v391_v26 }
  0x3b   :  { %1495 = vmatmul.mubr.msk.f32.gmra.mrb[14].mxu0 %vm291_vm14, %v290_v28  ;;  %1507 = vmatmul.mubr.msk.f32.gmra.mrb[14].mxu1 %vm291_vm14, %v392_v29 }
  0xea   :  { %v1932_v31 = vpop.f32.mrb[0].mxu0 }
  0xeb   :  { %v1934_v32 = vpop.f32.mrb[0].mxu1  ;;  %v510_v33 = vmul.f32 %v1932_v31, %v1932_v31  ;;  %v1938_v34 = vpop.f32.mrb[1].mxu0 }
  0xec   :  { %v550_v35 = vmul.f32 %v1934_v32, %v1934_v32  ;;  %v1942_v36 = vpop.f32.mrb[1].mxu1  ;;  %v509_v37 = vmul.f32 %v1938_v34, %v1938_v34 }
  0xed   :  { %v549_v38 = vmul.f32 %v1942_v36, %v1942_v36 }
  0xee   :  { %v513_v39 = vadd.f32 %v510_v33, %v509_v37  ;;  %v1948_v40 = vpop.f32.mrb[2].mxu0 }
  0xef   :  { %v553_v41 = vadd.f32 %v550_v35, %v549_v38  ;;  %v1950_v42 = vpop.f32.mrb[2].mxu1  ;;  %v1952_v43 = vpop.f32.mrb[3].mxu0  ;;  %v512_v44 = vmul.f32 %v1948_v40, %v1948_v40 }
  0xf0   :  { %v511_v45 = vmul.f32 %v1952_v43, %v1952_v43  ;;  %v1958_v46 = vpop.f32.mrb[3].mxu1  ;;  %v552_v49 = vmul.f32 %v1950_v42, %v1950_v42 }
  0xf1   :  { %v551_v47 = vmul.f32 %v1958_v46, %v1958_v46 }
  0xf2   :  { %v514_v48 = vadd.f32 %v513_v39, %v511_v45 }
  0xf3   :  { %v554_v50 = vadd.f32 %v553_v41, %v551_v47  ;;  %v1964_v51 = vpop.f32.mrb[4].mxu0 }
  0xf4   :  { %v515_v52 = vadd.f32 %v514_v48, %v512_v44  ;;  %v1966_v53 = vpop.f32.mrb[4].mxu1  ;;  %v590_v54 = vmul.f32 %v1964_v51, %v1964_v51  ;;  %v1970_v55 = vpop.f32.mrb[5].mxu0 }
  0xf5   :  { %v555_v56 = vadd.f32 %v554_v50, %v552_v49  ;;  %v491_v57 = vmul.f32 %v1966_v53, %v1966_v53  ;;  %v1974_v58 = vpop.f32.mrb[5].mxu1  ;;  %v589_v59 = vmul.f32 %v1970_v55, %v1970_v55 }
  0xf6   :  { %v516_v60 = vrot.slane %v515_v52, 4  ;;  %v490_v61 = vmul.f32 %v1974_v58, %v1974_v58 }
  0xf7   :  { %v556_v62 = vrot.slane %v555_v56, 4  ;;  %v593_v63 = vadd.f32 %v590_v54, %v589_v59  ;;  %v1980_v0 = vpop.f32.mrb[6].mxu0 }
  0xf8   :  { %v517_v1 = vadd.f32 %v516_v60, %v515_v52  ;;  %v494_v2 = vadd.f32 %v491_v57, %v490_v61  ;;  %v1982_v3 = vpop.f32.mrb[6].mxu1  ;;  %v1984_v4 = vpop.f32.mrb[7].mxu0  ;;  %v592_v6 = vmul.f32 %v1980_v0, %v1980_v0 }
  0xf9   :  { %v557_v5 = vadd.f32 %v556_v62, %v555_v56  ;;  %v591_v7 = vmul.f32 %v1984_v4, %v1984_v4  ;;  %v1990_v8 = vpop.f32.mrb[7].mxu1  ;;  %v493_v10 = vmul.f32 %v1982_v3, %v1982_v3 }
  0xfa   :  { %v518_v9 = vrot.slane %v517_v1, 2  ;;  %v492_v11 = vmul.f32 %v1990_v8, %v1990_v8 }
  0xfb   :  { %v558_v12 = vrot.slane %v557_v5, 2  ;;  %v594_v13 = vadd.f32 %v593_v63, %v591_v7 }
  0xfc   :  { %v519_v14 = vadd.f32 %v518_v9, %v517_v1  ;;  %v495_v15 = vadd.f32 %v494_v2, %v492_v11 }
  0xfd   :  { %v559_v16 = vadd.f32 %v558_v12, %v557_v5  ;;  %v595_v17 = vadd.f32 %v594_v13, %v592_v6 }
  0xfe   :  { %v520_v18 = vrot.slane %v519_v14, 1  ;;  %v496_v19 = vadd.f32 %v495_v15, %v493_v10 }
  0xff   :  { %v560_v20 = vrot.slane %v559_v16, 1  ;;  %v596_v21 = vrot.slane %v595_v17, 4 }
 0x100   :  { %v521_v22 = vadd.f32 %v520_v18, %v519_v14  ;;  %v497_v23 = vrot.slane %v496_v19, 4 }
 0x101   :  { %v561_v24 = vadd.f32 %v560_v20, %v559_v16  ;;  %v597_v25 = vadd.f32 %v596_v21, %v595_v17  ;;  %v1996_v26 = vpop.f32.mrb[8].mxu0 }
 0x102   :  { %v522_v27 = vmax.f32 %v521_v22, 1e-24  ;;  %v498_v28 = vadd.f32 %v497_v23, %v496_v19  ;;  %v1998_v29 = vpop.f32.mrb[8].mxu1  ;;  %v1055_v30 = vmul.f32 %v1996_v26, %v1996_v26  ;;  %v2002_v33 = vpop.f32.mrb[9].mxu0 }
 0x103   :  { %v562_v35 = vmax.f32 %v561_v24, 1e-24  ;;  %v598_v37 = vrot.slane %v597_v25, 2  ;;  %v1095_v38 = vmul.f32 %v1998_v29, %v1998_v29  ;;  %v2006_v39 = vpop.f32.mrb[9].mxu1  ;;  %v1054_v41 = vmul.f32 %v2002_v33, %v2002_v33 }
 0x104   :  { %1576 = vrsqrt.f32 %v522_v27  ;;  %v499_v44 = vrot.slane %v498_v28, 2  ;;  %v1094_v45 = vmul.f32 %v2006_v39, %v2006_v39 }
 0x105   :  { %1578 = vrsqrt.f32 %v562_v35  ;;  %v599_v47 = vadd.f32 %v598_v37, %v597_v25  ;;  %v1058_v48 = vadd.f32 %v1055_v30, %v1054_v41 }
 0x106   :  { %v500_v49 = vadd.f32 %v499_v44, %v498_v28  ;;  %v1098_v50 = vadd.f32 %v1095_v38, %v1094_v45  ;;  %v2012_v52 = vpop.f32.mrb[10].mxu0  ;;  %v2014_v54 = vpop.f32.mrb[10].mxu1 }
 0x107   :  { %v600_v56 = vrot.slane %v599_v47, 1  ;;  %v2016_v57 = vpop.f32.mrb[11].mxu0  ;;  %v2018_v59 = vpop.f32.mrb[11].mxu1  ;;  %v1057_v61 = vmul.f32 %v2012_v52, %v2012_v52  ;;  %v1097_v5 = vmul.f32 %v2014_v54, %v2014_v54 }
 0x108   :  { %v501_v60 = vrot.slane %v500_v49, 1  ;;  %v1056_v62 = vmul.f32 %v2016_v57, %v2016_v57  ;;  %v1096_v63 = vmul.f32 %v2018_v59, %v2018_v59 }
 0x109   :  { %v601_v1 = vadd.f32 %v600_v56, %v599_v47 }
 0x10a   :  { %v502_v2 = vadd.f32 %v501_v60, %v500_v49  ;;  %v1059_v6 = vadd.f32 %v1058_v48, %v1056_v62  ;;  %v1099_v7 = vadd.f32 %v1098_v50, %v1096_v63  ;;  %v2028_v9 = vpop.f32.mrb[12].mxu1  ;;  %v2030_v10 = vpop.f32.mrb[12].mxu0 }
 0x10b   :  { %v602_v11 = vmax.f32 %v601_v1, 1e-24  ;;  %v1036_v12 = vmul.f32 %v2028_v9, %v2028_v9  ;;  %v2034_v13 = vpop.f32.mrb[13].mxu1  ;;  %v2036_v14 = vpop.f32.mrb[13].mxu0  ;;  %v1135_v19 = vmul.f32 %v2030_v10, %v2030_v10 }
 0x10c   :  { %v503_v15 = vmax.f32 %v502_v2, 1e-24  ;;  %v1060_v16 = vadd.f32 %v1059_v6, %v1057_v61  ;;  %v1100_v17 = vadd.f32 %v1099_v7, %v1097_v5  ;;  %v1035_v18 = vmul.f32 %v2034_v13, %v2034_v13 }
 0x10d   :  { %1580 = vrsqrt.f32 %v602_v11  ;;  %v1134_v20 = vmul.f32 %v2036_v14, %v2036_v14 }
 0x10e   :  { %v1577_v21 = vpop.eup %1576  ;;  %1582 = vrsqrt.f32 %v503_v15  ;;  %v1061_v22 = vrot.slane %v1060_v16, 4  ;;  %v1101_v23 = vrot.slane %v1100_v17, 4  ;;  %v1039_v24 = vadd.f32 %v1036_v12, %v1035_v18  ;;  %v2044_v25 = vpop.f32.mrb[14].mxu0 }
 0x10f   :  { %v2046_v27 = vpop.f32.mrb[14].mxu1  ;;  %v1579_v28 = vpop.eup %1578  ;;  %v2049_v30 = vmul.f32 %v1577_v21, %v1952_v43  ;;  %v2052_v35 = vmul.f32 %v1577_v21, %v1938_v34  ;;  %v2055_v37 = vmul.f32 %v1577_v21, %v1932_v31  ;;  %v2058_v38 = vmul.f32 %v1577_v21, %v1948_v40 }
 0x110   :  { %v2060_v41 = vpop.f32.mrb[15].mxu0  ;;  %v2062_v44 = vpop.f32.mrb[15].mxu1  ;;  %v2065_v45 = vmul.f32 %v1579_v28, %v1958_v46  ;;  %v2068_v47 = vmul.f32 %v1579_v28, %v1942_v36  ;;  %v2071_v43 = vmul.f32 %v1579_v28, %v1934_v32  ;;  %v2074_v34 = vmul.f32 %v1579_v28, %v1950_v42 }
 0x111   :  { %v1062_v31 = vadd.f32 %v1061_v22, %v1060_v16  ;;  %v1102_v48 = vadd.f32 %v1101_v23, %v1100_v17  ;;  %v1138_v40 = vadd.f32 %v1135_v19, %v1134_v20  ;;  %v1137_v49 = vmul.f32 %v2044_v25, %v2044_v25 }
 0x112   :  { %v1136_v50 = vmul.f32 %v2060_v41, %v2060_v41  ;;  %v1037_v46 = vmul.f32 %v2062_v44, %v2062_v44  ;;  %v1038_v32 = vmul.f32 %v2046_v27, %v2046_v27 }
 0x113   :  { %v1063_v36 = vrot.slane %v1062_v31, 2  ;;  %v1103_v56 = vrot.slane %v1102_v48, 2 }
 0x114   :  { %v1139_v60 = vadd.f32 %v1138_v40, %v1136_v50  ;;  %v1040_v42 = vadd.f32 %v1039_v24, %v1037_v46 }
 0x115   :  { %v1064_v61 = vadd.f32 %v1063_v36, %v1062_v31  ;;  %v1104_v62 = vadd.f32 %v1103_v56, %v1102_v48 }
 0x116   :  { %v1140_v63 = vadd.f32 %v1139_v60, %v1137_v49  ;;  %v1041_v1 = vadd.f32 %v1040_v42, %v1038_v32 }
 0x117   :  { %v1581_v2 = vpop.eup %1580  ;;  %v1065_v5 = vrot.slane %v1064_v61, 1  ;;  %v1105_v6 = vrot.slane %v1104_v62, 1 }
 0x118   :  { %v1583_v7 = vpop.eup %1582  ;;  %v2085_v11 = vmul.f32 %v1581_v2, %v1984_v4  ;;  %v1141_v12 = vrot.slane %v1140_v63, 4  ;;  %v1042_v15 = vrot.slane %v1041_v1, 4  ;;  %v2088_v16 = vmul.f32 %v1581_v2, %v1970_v55 }
 0x119   :  { %v2091_v17 = vmul.f32 %v1583_v7, %v1974_v58  ;;  %v2094_v18 = vmul.f32 %v1583_v7, %v1966_v53  ;;  %v2097_v19 = vmul.f32 %v1583_v7, %v1990_v8  ;;  %v2100_v20 = vmul.f32 %v1583_v7, %v1982_v3 }
 0x11a   :  { %v1066_v21 = vadd.f32 %v1065_v5, %v1064_v61  ;;  %v1106_v4 = vadd.f32 %v1105_v6, %v1104_v62  ;;  %v1142_v22 = vadd.f32 %v1141_v12, %v1140_v63  ;;  %v1043_v23 = vadd.f32 %v1042_v15, %v1041_v1 }
 0x11b   :  { %v528_v55 = vmul.f32 %v2052_v35, %v2091_v17  ;;  %v529_v58 = vmul.f32 %v2055_v37, %v2094_v18  ;;  %v530_v53 = vmul.f32 %v2049_v30, %v2097_v19  ;;  %v531_v8 = vmul.f32 %v2058_v38, %v2100_v20 }
 0x11c   :  { %v568_v3 = vmul.f32 %v2068_v47, %v2091_v17  ;;  %v569_v24 = vmul.f32 %v2071_v43, %v2094_v18  ;;  %v570_v28 = vmul.f32 %v2065_v45, %v2097_v19  ;;  %v571_v31 = vmul.f32 %v2074_v34, %v2100_v20 }
 0x11d   :  { %v532_v48 = vadd.f32 %v529_v58, %v528_v55  ;;  %v1067_v40 = vmax.f32 %v1066_v21, 1e-24  ;;  %v1107_v49 = vmax.f32 %v1106_v4, 1e-24  ;;  %v1143_v50 = vrot.slane %v1142_v22, 2 }
 0x11e   :  { %v572_v46 = vadd.f32 %v569_v24, %v568_v3  ;;  %v1044_v36 = vrot.slane %v1043_v23, 2  ;;  %v2119_v56 = vmul.f32 %v1581_v2, %v1964_v51  ;;  %v2122_v32 = vmul.f32 %v1581_v2, %v1980_v0 }
 0x11f   :  { %v533_v60 = vadd.f32 %v532_v48, %v530_v53  ;;  %1584 = vrsqrt.f32 %v1067_v40  ;;  %v1144_v42 = vadd.f32 %v1143_v50, %v1142_v22 }
 0x120   :  { %v573_v61 = vadd.f32 %v572_v46, %v570_v28  ;;  %1586 = vrsqrt.f32 %v1107_v49  ;;  %v1045_v62 = vadd.f32 %v1044_v36, %v1043_v23 }
 0x121   :  { %v534_v63 = vadd.f32 %v533_v60, %v531_v8  ;;  %v1145_v1 = vrot.slane %v1144_v42, 1 }
 0x122   :  { %v574_v5 = vadd.f32 %v573_v61, %v571_v31  ;;  %v1046_v6 = vrot.slane %v1045_v62, 1 }
 0x123   :  { %v535_v7 = vrot.slane %v534_v63, 4  ;;  %v1146_v12 = vadd.f32 %v1145_v1, %v1144_v42 }
 0x124   :  { %v575_v15 = vrot.slane %v574_v5, 4  ;;  %v1047_v21 = vadd.f32 %v1046_v6, %v1045_v62 }
 0x125   :  { %v536_v4 = vadd.f32 %v535_v7, %v534_v63  ;;  %v1147_v51 = vmax.f32 %v1146_v12, 1e-24 }
 0x126   :  { %v576_v55 = vadd.f32 %v575_v15, %v574_v5  ;;  %v1048_v58 = vmax.f32 %v1047_v21, 1e-24 }
 0x127   :  { %v537_v0 = vrot.slane %v536_v4, 2  ;;  %1588 = vrsqrt.f32 %v1147_v51 }
 0x128   :  { %v577_v2 = vrot.slane %v576_v55, 2  ;;  %1590 = vrsqrt.f32 %v1048_v58 }
 0x129   :  { %v1585_v22 = vpop.eup %1584  ;;  %v538_v53 = vadd.f32 %v537_v0, %v536_v4 }
 0x12a   :  { %v1587_v3 = vpop.eup %1586  ;;  %v578_v23 = vadd.f32 %v577_v2, %v576_v55  ;;  %v2125_v8 = vmul.f32 %v1585_v22, %v2016_v57  ;;  %v2128_v24 = vmul.f32 %v1585_v22, %v2002_v33  ;;  %v2131_v28 = vmul.f32 %v1585_v22, %v1996_v26 }
 0x12b   :  { %v539_v31 = vrot.slane %v538_v53, 1  ;;  %v2134_v48 = vmul.f32 %v1587_v3, %v2018_v59  ;;  %v2137_v40 = vmul.f32 %v1585_v22, %v2012_v52  ;;  %v2140_v49 = vmul.f32 %v1587_v3, %v2006_v39 }
 0x12c   :  { %v579_v50 = vrot.slane %v578_v23, 1  ;;  %v2143_v57 = vmul.f32 %v1587_v3, %v1998_v29  ;;  %v2146_v33 = vmul.f32 %v1587_v3, %v2014_v54 }
 0x12d   :  { %v540_v46 = vadd.f32 %v539_v31, %v538_v53 }
 0x12e   :  { %v580_v26 = vadd.f32 %v579_v50, %v578_v23 }
 0x12f   :  { %v541_v36 = vmul.f32 %v540_v46, %v2091_v17  ;;  %v542_v59 = vmul.f32 %v540_v46, %v2094_v18  ;;  %v543_v60 = vmul.f32 %v540_v46, %v2097_v19  ;;  %v544_v52 = vmul.f32 %v540_v46, %v2100_v20 }
 0x130   :  { %v581_v39 = vmul.f32 %v580_v26, %v2091_v17  ;;  %v582_v42 = vmul.f32 %v580_v26, %v2094_v18  ;;  %v583_v29 = vmul.f32 %v580_v26, %v2097_v19  ;;  %v584_v61 = vmul.f32 %v580_v26, %v2100_v20 }
 0x131   :  { %v1589_v54 = vpop.eup %1588  ;;  %v545_v62 = vsub.f32 %v2052_v35, %v541_v36  ;;  %v546_v63 = vsub.f32 %v2055_v37, %v542_v59  ;;  %v547_v1 = vsub.f32 %v2049_v30, %v543_v60  ;;  %v548_v5 = vsub.f32 %v2058_v38, %v544_v52 }
 0x132   :  { %v1591_v6 = vpop.eup %1590  ;;  %v585_v7 = vsub.f32 %v2068_v47, %v581_v39  ;;  %v586_v17 = vsub.f32 %v2071_v43, %v582_v42  ;;  %v587_v18 = vsub.f32 %v2065_v45, %v583_v29  ;;  %v2164_v19 = vmul.f32 %v1589_v54, %v2060_v41 }
 0x133   :  { %v610_v20 = vadd.f32 %v2085_v11, %v547_v1  ;;  %v1050_v35 = vmul.f32 %v1591_v6, %v2034_v13  ;;  %v1051_v37 = vmul.f32 %v1591_v6, %v2028_v9  ;;  %v1052_v30 = vmul.f32 %v1591_v6, %v2062_v44 }
 0x134   :  { %v1053_v38 = vmul.f32 %v1591_v6, %v2046_v27  ;;  %v2172_v12 = vmul.f32 %v1589_v54, %v2036_v14  ;;  %v2175_v47 = vmul.f32 %v1589_v54, %v2030_v10  ;;  %v588_v45 = vsub.f32 %v2074_v34, %v584_v61 }
 0x135   :  { %v614_v41 = vsub.f32 %v610_v20, %v587_v18  ;;  %v1073_v43 = vmul.f32 %v2128_v24, %v1050_v35  ;;  %v1074_v11 = vmul.f32 %v2131_v28, %v1051_v37  ;;  %v1075_v13 = vmul.f32 %v2125_v8, %v1052_v30 }
 0x136   :  { %v1076_v9 = vmul.f32 %v2137_v40, %v1053_v38  ;;  %v1113_v44 = vmul.f32 %v2140_v49, %v1050_v35  ;;  %v1114_v27 = vmul.f32 %v2143_v57, %v1051_v37  ;;  %v1115_v14 = vmul.f32 %v2134_v48, %v1052_v30 }
 0x137   :  { %v1077_v15 = vadd.f32 %v1074_v11, %v1073_v43  ;;  %v1116_v10 = vmul.f32 %v2146_v33, %v1053_v38  ;;  %v608_v34 = vadd.f32 %v2088_v16, %v545_v62  ;;  %v609_v4 = vadd.f32 %v2119_v56, %v546_v63 }
 0x138   :  { %v1117_v21 = vadd.f32 %v1114_v27, %v1113_v44  ;;  %v611_v51 = vadd.f32 %v2122_v32, %v548_v5  ;;  %v1152_v55 = vmul.f32 %v1589_v54, %v2044_v25  ;;  %v618_v26 = vand.u32 2147483647, %v614_v41 }
 0x139   :  { %v1078_v58 = vadd.f32 %v1077_v15, %v1075_v13  ;;  %v612_v0 = vsub.f32 %v608_v34, %v585_v7  ;;  %v613_v22 = vsub.f32 %v609_v4, %v586_v17 }
 0x13a   :  { %v1118_v2 = vadd.f32 %v1117_v21, %v1115_v14  ;;  %v615_v53 = vsub.f32 %v611_v51, %v588_v45 }
 0x13b   :  { %v1079_v3 = vadd.f32 %v1078_v58, %v1076_v9  ;;  %v616_v23 = vand.u32 2147483647, %v612_v0  ;;  %v617_v50 = vand.u32 2147483647, %v613_v22 }
 0x13c   :  { %v1119_v31 = vadd.f32 %v1118_v2, %v1116_v10  ;;  %v619_v56 = vand.u32 2147483647, %v615_v53 }
 0x13d   :  { %v1080_v46 = vrot.slane %v1079_v3, 4  ;;  %v620_v16 = vadd.f32 %v617_v50, %v616_v23  ;;  %v1175_v23 = vstv %s2219_s0 }
 0x13e   :  { %v1120_v36 = vrot.slane %v1119_v31, 4 }
 0x13f   :  { %v1081_v59 = vadd.f32 %v1080_v46, %v1079_v3  ;;  %v621_v52 = vadd.f32 %v620_v16, %v618_v26  ;;  %v1178_v46 = vld [vmem:[%s2221_s2] sm:$0x1] }
 0x140   :  { %v1121_v60 = vadd.f32 %v1120_v36, %v1119_v31 }
 0x141   :  { %v1082_v32 = vrot.slane %v1081_v59, 2  ;;  %v622_v25 = vadd.f32 %v621_v52, %v619_v56 }
 0x142   :  { %v1122_v39 = vrot.slane %v1121_v60, 2 }
 0x143   :  { %v1083_v42 = vadd.f32 %v1082_v32, %v1081_v59  ;;  %v623_v61 = vrot.slane %v622_v25, 4 }
 0x144   :  { %v1123_v29 = vadd.f32 %v1122_v39, %v1121_v60 }
 0x145   :  { %v1084_v54 = vrot.slane %v1083_v42, 1  ;;  %v624_v63 = vadd.f32 %v623_v61, %v622_v25 }
 0x146   :  { %v1124_v62 = vrot.slane %v1123_v29, 1 }
 0x147   :  { %v1085_v1 = vadd.f32 %v1084_v54, %v1083_v42  ;;  %v625_v6 = vrot.slane %v624_v63, 2 }
 0x148   :  { %v1125_v5 = vadd.f32 %v1124_v62, %v1123_v29 }
 0x149   :  { %v1086_v7 = vmul.f32 %v1085_v1, %v1050_v35  ;;  %v1087_v17 = vmul.f32 %v1085_v1, %v1051_v37  ;;  %v1088_v18 = vmul.f32 %v1085_v1, %v1052_v30  ;;  %v1089_v20 = vmul.f32 %v1085_v1, %v1053_v38 }
 0x14a   :  { %v1126_v45 = vmul.f32 %v1125_v5, %v1050_v35  ;;  %v1127_v41 = vmul.f32 %v1125_v5, %v1051_v37  ;;  %v1128_v43 = vmul.f32 %v1125_v5, %v1052_v30  ;;  %v1129_v11 = vmul.f32 %v1125_v5, %v1053_v38 }
 0x14b   :  { %v1090_v13 = vsub.f32 %v2128_v24, %v1086_v7  ;;  %v1091_v9 = vsub.f32 %v2131_v28, %v1087_v17  ;;  %v1092_v44 = vsub.f32 %v2125_v8, %v1088_v18  ;;  %v1093_v27 = vsub.f32 %v2137_v40, %v1089_v20 }
 0x14c   :  { %v1130_v14 = vsub.f32 %v2140_v49, %v1126_v45  ;;  %v1131_v15 = vsub.f32 %v2143_v57, %v1127_v41  ;;  %v1132_v10 = vsub.f32 %v2134_v48, %v1128_v43  ;;  %v1133_v34 = vsub.f32 %v2146_v33, %v1129_v11 }
 0x14d   :  { %v1153_v35 = vadd.f32 %v2172_v12, %v1090_v13  ;;  %v1154_v37 = vadd.f32 %v2175_v47, %v1091_v9  ;;  %v1155_v24 = vadd.f32 %v2164_v19, %v1092_v44  ;;  %v626_v30 = vadd.f32 %v625_v6, %v624_v63 }
 0x14e   :  { %v1156_v28 = vadd.f32 %v1152_v55, %v1093_v27 }
 0x14f   :  { %v1157_v38 = vsub.f32 %v1153_v35, %v1130_v14  ;;  %v1158_v8 = vsub.f32 %v1154_v37, %v1131_v15  ;;  %v1159_v21 = vsub.f32 %v1155_v24, %v1132_v10  ;;  %v627_v40 = vrot.slane %v626_v30, 1 }
 0x150   :  { %v1160_v4 = vsub.f32 %v1156_v28, %v1133_v34 }
 0x151   :  { %v1161_v49 = vand.u32 2147483647, %v1157_v38  ;;  %v1162_v51 = vand.u32 2147483647, %v1158_v8  ;;  %v628_v57 = vadd.f32 %v627_v40, %v626_v30  ;;  %v1163_v58 = vand.u32 2147483647, %v1159_v21 }
 0x152   :  { %v1164_v2 = vand.u32 2147483647, %v1160_v4 }
 0x153   :  { %v1165_v48 = vadd.f32 %v1162_v51, %v1161_v49  ;;  %v1181_v0 = vsub.f32 0.0, %v628_v57 }
 0x155   :  { %v1166_v33 = vadd.f32 %v1165_v48, %v1163_v58  ;;  %1182 = vst [vmem:[#allocation3 + $0x1] sm:$0x1] %v1181_v0 }
 0x157   :  { %v1167_v12 = vadd.f32 %v1166_v33, %v1164_v2 }
 0x159   :  { %v1168_v47 = vrot.slane %v1167_v12, 4 }
 0x15b   :  { %v1169_v22 = vadd.f32 %v1168_v47, %v1167_v12 }
 0x15d   :  { %v1170_v19 = vrot.slane %v1169_v22, 2 }
 0x15f   :  { %v1171_v53 = vadd.f32 %v1170_v19, %v1169_v22 }
 0x161   :  { %v1172_v55 = vrot.slane %v1171_v53, 1 }
 0x163   :  { %v1173_v3 = vadd.f32 %v1172_v55, %v1171_v53 }
 0x165   :  { %v1174_v31 = vsub.f32 %v1173_v3, %v628_v57 }
 0x167   :  { %v1176_v50 = vadd.f32 %v1175_v23, %v1174_v31 }
 0x169   :  { %v1177_v26 = vmax.f32 %v1176_v50, 0.0 }
 0x16b   :  { %v1179_v36 = vmul.f32 %v1178_v46, %v1177_v26 }
 0x16d   :  { %1180 = vst [vmem:[#allocation3] sm:$0x1] %v1179_v36 }
 0x16e   :  { %1603 = shalt.err (!%p1600_p4)
}
 0x16f   :  { %s1604_s13 = scalar_lea.hbm %s2225_s6, 32 }
 0x170   :  { %p1605_p5 = scmp.ne.s32.totalorder %s2225_s6, %s1604_s13  ;;  %p1608_p6 = scmp.lt.u32.totalorder %s1604_s13, %s2225_s6 }
 0x172   :  { %p1610_p7 = pnand %p1608_p6, %p1605_p5 }
 0x174   :  { %1613 = shalt.err (!%p1610_p7)
}
 0x175   :  { %1192 = dma.vmem_to_hbm [thread:$0]  %s1190_s10, 32, %s2225_s6, [#allocation4]  }
 0x176   :  { %1614 = dma.done.wait [#allocation4], 32  }
 0x177   :  { %1615 = vsyncadd [#allocation4], 4294967264 }
 0x178   :  { %1196 = vsyncpa [#allocation4], 1 }

</bundles_post_ra>
